<compile_context>
chip_gen: v7x
topology: tpu7x:2x2x1
jax: 0.10.0
libtpu: 0.0.40
codegen_flags: <defaults>
</compile_context>

<pallas_src>
import math

import jax
import jax.numpy as jnp
from jax.experimental import pallas as pl
from jax.experimental.pallas import tpu as pltpu

# ---- module hyper-parameters (MultiHeadAttentionNetwork defaults) -----------
N_HEADS = 2
TEMPERATURE = (1.0, 1.0)
SIZE0, SIZE1 = 784, 128            # input features, shared feature dim
STEP = SIZE1 // N_HEADS            # 64  per-head slice of the feature dim
DIM = STEP // 2                    # 32  attention hidden dim (head_size='small')
GATE = N_HEADS * DIM               # 64  width of the fused tanh (= sigmoid) half
assert 2 * GATE == SIZE1           # the fused gate matmul exactly fills 128 lanes

# ---- packed-parameter row layout: wpack has shape (R_TOTAL, 128) f32 ---------
R_WAB = 0                          # 128 rows : fused gate weight [tanh | sigmoid] blocks
R_WC = R_WAB + SIZE1               #  64 rows : lane-expanded per-head score weight
R_B1 = R_WC + GATE                 #   1 row  : feature-net bias
R_BAB = R_B1 + 1                   #   1 row  : fused gate bias
R_BC = R_BAB + 1                   #   1 row  : lane-expanded per-head score bias
R_WCLS = R_BC + 1                  #   1 row  : classifier weight
R_BCLS = R_WCLS + 1                #   1 row  : classifier bias (lane 0)
R_TOTAL = R_BCLS + 1               # 197

_NEG = -1e30                       # finite "-inf" (avoids inf-inf NaNs in online softmax)


def _mha_kernel(n_ref, x_ref, w1t_ref, wpack_ref, yprob_ref, m_sc, l_sc, acc_sc):
    i = pl.program_id(0)
    nt = x_ref.shape[0]

    @pl.when(i == 0)
    def _init():
        m_sc[...] = jnp.full_like(m_sc, _NEG)
        l_sc[...] = jnp.zeros_like(l_sc)
        acc_sc[...] = jnp.zeros_like(acc_sc)

    # ---- shared feature net: Linear(784 -> 128) + ReLU (MXU, f32 accumulate) ----
    hfeat = jnp.dot(x_ref[...], w1t_ref[...], preferred_element_type=jnp.float32)
    hfeat = jnp.maximum(hfeat + wpack_ref[R_B1:R_B1 + 1, :], 0.0)          # (nt, 128)

    # ---- both gated-attention heads fused into one (nt,128)@(128,128) matmul ----
    pre = jnp.dot(hfeat, wpack_ref[R_WAB:R_WAB + SIZE1, :],
                  preferred_element_type=jnp.float32)
    pre = pre + wpack_ref[R_BAB:R_BAB + 1, :]                              # (nt, 128)
    ab = jnp.tanh(pre[:, :GATE]) * jax.nn.sigmoid(pre[:, GATE:])           # (nt, 64)

    # per-head attention logits, lane-expanded: head-h's logit replicated over
    # head-h's 64 lanes (Wc / bc are packed pre-replicated, 1/temperature folded in)
    scores = jnp.dot(ab, wpack_ref[R_WC:R_WC + GATE, :],
                     preferred_element_type=jnp.float32)
    scores = scores + wpack_ref[R_BC:R_BC + 1, :]                          # (nt, 128)

    # mask padded rows so they get zero softmax weight
    row_ids = i * nt + jax.lax.broadcasted_iota(jnp.int32, (nt, 1), 0)
    scores = jnp.where(row_ids < n_ref[0], scores, _NEG)                   # (nt, 128)

    # ---- online softmax over instances (axis 0), carried across grid steps ----
    m_prev = m_sc[...]                                                     # (1, 128)
    m_curr = jnp.maximum(m_prev, jnp.max(scores, axis=0, keepdims=True))
    alpha = jnp.exp(m_prev - m_curr)                                       # (1, 128)
    p = jnp.exp(scores - m_curr)                                           # (nt, 128)

    # O(N) reductions as MXU dots against a ones row (keeps the XLU off the hot path)
    ones = jnp.ones((1, nt), jnp.float32)
    l_sc[...] = alpha * l_sc[...] + jnp.dot(
        ones, p, preferred_element_type=jnp.float32)                       # (1, 128)
    acc_sc[...] = alpha * acc_sc[...] + jnp.dot(
        ones, p * hfeat, preferred_element_type=jnp.float32)               # (1, 128)
    m_sc[...] = m_curr

    # ---- finalize on the last tile: normalize, classify, sigmoid ----
    @pl.when(i == pl.num_programs(0) - 1)
    def _finalize():
        # exact reciprocal: runs once per bag, so an approx EUP rcp buys nothing here
        m_bag = acc_sc[...] / l_sc[...]                                    # (1, 128) == M
        logit = jnp.sum(m_bag * wpack_ref[R_WCLS:R_WCLS + 1, :],
                        axis=-1, keepdims=True)
        logit = logit + wpack_ref[R_BCLS:R_BCLS + 1, 0:1]                  # (1, 1)
        yprob_ref[...] = jax.nn.sigmoid(logit)


def _round_up(a, b):
    return (a + b - 1) // b * b


def mha_forward(h_nchw, w1t, wpack, *, input_dtype=jnp.float32, max_tile=512):
    """Returns (Y_prob, Y_hat), each of shape (1,), matching the PyTorch module."""
    n = h_nchw.shape[0]
    x = h_nchw.reshape(n, SIZE0).astype(jnp.float32)

    # N grid: 512-row tiles (~1.6 MB f32 per x tile -> ~4 MB VMEM with double
    # buffering; fits v5e/v6e/v7x scoped-VMEM budgets).  Small bags collapse to
    # a single, minimally padded tile.
    n_tile = min(max_tile, _round_up(max(n, 1), 8))
    n_pad = _round_up(n, n_tile)
    if n_pad != n:
        x = jnp.pad(x, ((0, n_pad - n), (0, 0)))        # zero rows; masked in-kernel
    x = x.astype(input_dtype)                           # bf16 option halves HBM traffic
    w1 = w1t.astype(input_dtype)

    yprob = pl.pallas_call(
        _mha_kernel,
        out_shape=jax.ShapeDtypeStruct((1, 1), jnp.float32),
        grid_spec=pltpu.PrefetchScalarGridSpec(
            num_scalar_prefetch=1,                      # true row count -> SMEM
            grid=(n_pad // n_tile,),
            in_specs=[
                pl.BlockSpec((n_tile, SIZE0), lambda i, n_s: (i, 0)),   # x tiles
                pl.BlockSpec((SIZE0, SIZE1), lambda i, n_s: (0, 0)),    # w1t (resident)
                pl.BlockSpec((R_TOTAL, SIZE1), lambda i, n_s: (0, 0)),  # packed params
            ],
            out_specs=pl.BlockSpec((1, 1), lambda i, n_s: (0, 0)),
            scratch_shapes=[
                pltpu.VMEM((1, SIZE1), jnp.float32),     # running max (lane-expanded)
                pltpu.VMEM((1, SIZE1), jnp.float32),     # running denominator
                pltpu.VMEM((1, SIZE1), jnp.float32),     # running weighted bag sum
            ],
        ),
        compiler_params=pltpu.CompilerParams(
            dimension_semantics=("arbitrary",),          # sequential reduction over N
            vmem_limit_bytes=32 * 1024 * 1024,
        ),
    )(jnp.array([n], jnp.int32), x, w1, wpack)

    y_prob = yprob.reshape(1)
    y_hat = (y_prob >= 0.5).astype(jnp.float32)          # threshold in the wrapper
    return y_prob, y_hat


# ---------------------------- parameters -------------------------------------
def init_params(key):
    """Xavier-normal weights / zero biases, as initialize_weights() does."""
    def xavier_normal(k, out_f, in_f):
        std = math.sqrt(2.0 / (in_f + out_f))
        return (std * jax.random.normal(k, (out_f, in_f))).astype(jnp.float32)

    keys = jax.random.split(key, 2 + 3 * N_HEADS)
    return dict(
        W1=xavier_normal(keys[0], SIZE1, SIZE0),                       # (128, 784)
        b1=jnp.zeros((SIZE1,), jnp.float32),
        Wa=jnp.stack([xavier_normal(keys[1 + 3 * h], DIM, STEP) for h in range(N_HEADS)]),
        ba=jnp.zeros((N_HEADS, DIM), jnp.float32),
        Wb=jnp.stack([xavier_normal(keys[2 + 3 * h], DIM, STEP) for h in range(N_HEADS)]),
        bb=jnp.zeros((N_HEADS, DIM), jnp.float32),
        Wc=jnp.stack([xavier_normal(keys[3 + 3 * h], 1, DIM) for h in range(N_HEADS)]),
        bc=jnp.zeros((N_HEADS, 1), jnp.float32),
        Wcls=xavier_normal(keys[-1], 1, SIZE1),                        # (1, 128)
        bcls=jnp.zeros((1,), jnp.float32),
    )


def pack_params(params):
    """Pack per-layer parameters into (w1t, wpack) for the kernel."""
    wab = jnp.zeros((SIZE1, SIZE1), jnp.float32)
    bab = jnp.zeros((SIZE1,), jnp.float32)
    wc2e = jnp.zeros((GATE, SIZE1), jnp.float32)   # lane-expanded score weight
    bce = jnp.zeros((SIZE1,), jnp.float32)         # lane-expanded score bias
    for h in range(N_HEADS):
        r0, r1 = h * STEP, (h + 1) * STEP            # rows of h feeding this head
        a0, a1 = h * DIM, (h + 1) * DIM              # tanh columns of this head
        s0, s1 = GATE + h * DIM, GATE + (h + 1) * DIM  # sigmoid columns of this head
        wab = wab.at[r0:r1, a0:a1].set(params["Wa"][h].T)
        wab = wab.at[r0:r1, s0:s1].set(params["Wb"][h].T)
        bab = bab.at[a0:a1].set(params["ba"][h])
        bab = bab.at[s0:s1].set(params["bb"][h])
        # head-h's Wc (with 1/temperature folded in) replicated over head-h's lanes
        wc_col = params["Wc"][h][0] / TEMPERATURE[h]                   # (DIM,)
        wc2e = wc2e.at[a0:a1, r0:r1].set(jnp.tile(wc_col[:, None], (1, STEP)))
        bce = bce.at[r0:r1].set(params["bc"][h][0] / TEMPERATURE[h])
    bcls_row = jnp.zeros((SIZE1,), jnp.float32).at[0].set(params["bcls"][0])
    wpack = jnp.concatenate([
        wab,                      # rows   0:128  fused gate weight
        wc2e,                     # rows 128:192  lane-expanded score weight
        params["b1"][None, :],    # row  192      feature-net bias
        bab[None, :],             # row  193      fused gate bias
        bce[None, :],             # row  194      lane-expanded score bias
        params["Wcls"],           # row  195      classifier weight
        bcls_row[None, :],        # row  196      classifier bias (lane 0)
    ], axis=0)
    assert wpack.shape == (R_TOTAL, SIZE1)
    return params["W1"].T.astype(jnp.float32), wpack.astype(jnp.float32)


# ---------------------------- pure-JAX reference -----------------------------
def mha_reference(h_nchw, params):
    """Pure-JAX forward mirroring the PyTorch module (verification only)."""
    n = h_nchw.shape[0]
    x = h_nchw.reshape(n, SIZE0).astype(jnp.float32)
    hfeat = jnp.maximum(x @ params["W1"].T + params["b1"], 0.0)        # (N, 128)
    m_parts = []
    for head in range(N_HEADS):
        xh = hfeat[:, head * STEP:(head + 1) * STEP]                   # (N, 64)
        a = jnp.tanh(xh @ params["Wa"][head].T + params["ba"][head])
        b = jax.nn.sigmoid(xh @ params["Wb"][head].T + params["bb"][head])
        att = (a * b) @ params["Wc"][head].T + params["bc"][head]      # (N, 1)
        att = jax.nn.softmax(att[:, 0] / TEMPERATURE[head])            # over N
        m_parts.append(att[None, :] @ xh)                              # (1, 64)
    m_bag = jnp.concatenate(m_parts, axis=-1)                          # (1, 128)
    logits = (m_bag @ params["Wcls"].T)[:, 0] + params["bcls"]         # (1,)
    y_prob = jax.nn.sigmoid(logits)
    y_hat = (y_prob >= 0.5).astype(jnp.float32)
    return y_prob, y_hat


if __name__ == "__main__":
    key = jax.random.PRNGKey(0)
    pkey, xkey_small, xkey_big = jax.random.split(key, 3)
    params = init_params(pkey)
    w1t, wpack = pack_params(params)

    # Small bag of 8 MNIST-like instances, NCHW (single grid step).
    bag_small = jax.random.normal(xkey_small, (8, 1, 28, 28), dtype=jnp.float32)
    y_prob, y_hat = jax.block_until_ready(mha_forward(bag_small, w1t, wpack))
    y_prob_ref, y_hat_ref = mha_reference(bag_small, params)
    assert y_prob.shape == (1,) and y_hat.shape == (1,)
    assert jnp.allclose(y_prob, y_prob_ref, atol=5e-5, rtol=5e-5), (y_prob, y_prob_ref)
    if abs(float(y_prob_ref[0]) - 0.5) > 1e-3:   # avoid a flaky threshold compare
        assert jnp.array_equal(y_hat, y_hat_ref)

    # Larger bag: exercises the N grid (two 512-row tiles), the padded-row mask
    # and the online-softmax accumulator.
    bag_big = jax.random.normal(xkey_big, (1000, 1, 28, 28), dtype=jnp.float32)
    y_prob_b, _ = jax.block_until_ready(mha_forward(bag_big, w1t, wpack))
    y_prob_b_ref, _ = mha_reference(bag_big, params)
    assert jnp.allclose(y_prob_b, y_prob_b_ref, atol=5e-5, rtol=5e-5), (y_prob_b, y_prob_b_ref)

    # bf16-streamed inputs (HBM-traffic halving option for big bags on v6e/v7x).
    y_prob_bf, _ = jax.block_until_ready(
        mha_forward(bag_big, w1t, wpack, input_dtype=jnp.bfloat16))
    assert jnp.allclose(y_prob_bf, y_prob_b_ref, atol=5e-2), (y_prob_bf, y_prob_b_ref)

    print("KERNEL_OK")
</pallas_src>

<mosaic_0001>
module attributes {stable_mosaic.version = 11 : i64} {
  func.func @_mha_kernel(%arg0: i32, %arg1: memref<1xi32, #tpu.memory_space<smem>>, %arg2: memref<8x784xf32, #tpu.memory_space<vmem>>, %arg3: memref<784x128xf32, #tpu.memory_space<vmem>>, %arg4: memref<197x128xf32, #tpu.memory_space<vmem>>, %arg5: memref<1x1xf32, #tpu.memory_space<vmem>>, %arg6: memref<1x128xf32, #tpu.memory_space<vmem>>, %arg7: memref<1x128xf32, #tpu.memory_space<vmem>>, %arg8: memref<1x128xf32, #tpu.memory_space<vmem>>) attributes {dimension_semantics = [#tpu.dimension_semantics<arbitrary>], iteration_bounds = array<i64: 1>, scalar_prefetch = 1 : i64, scratch_operands = 3 : i64, tpu.core_type = #tpu.core_type<tc>, window_params = [{transform_indices = @transform_0, window_bounds = array<i64: 8, 784>}, {pipeline_mode = #tpu.pipeline_mode<synchronous>, transform_indices = @transform_1, window_bounds = array<i64: 784, 128>}, {pipeline_mode = #tpu.pipeline_mode<synchronous>, transform_indices = @transform_2, window_bounds = array<i64: 197, 128>}, {pipeline_mode = #tpu.pipeline_mode<synchronous>, transform_indices = @transform_3, window_bounds = array<i64: 1, 1>}]} {
    %c0_i32 = arith.constant 0 : i32
    %0 = arith.cmpi eq, %arg0, %c0_i32 : i32
    %1 = arith.extui %0 : i1 to i32
    %c0_i32_0 = arith.constant 0 : i32
    %2 = arith.cmpi ne, %1, %c0_i32_0 : i32
    scf.if %2 {
      %cst_34 = arith.constant -1.000000e+30 : f32
      %66 = vector.broadcast %cst_34 : f32 to vector<1x128xf32>
      %c0_35 = arith.constant 0 : index
      %c0_36 = arith.constant 0 : index
      %67 = vector.load %arg6[%c0_35, %c0_36] : memref<1x128xf32, #tpu.memory_space<vmem>>, vector<1x128xf32>
      tpu.vector_store %arg6[%c0_35, %c0_36], %66 {strides = array<i32>} : memref<1x128xf32, #tpu.memory_space<vmem>>, vector<1x128xf32>,
      %cst_37 = arith.constant 0.000000e+00 : f32
      %68 = vector.broadcast %cst_37 : f32 to vector<1x128xf32>
      %c0_38 = arith.constant 0 : index
      %c0_39 = arith.constant 0 : index
      %69 = vector.load %arg7[%c0_38, %c0_39] : memref<1x128xf32, #tpu.memory_space<vmem>>, vector<1x128xf32>
      tpu.vector_store %arg7[%c0_38, %c0_39], %68 {strides = array<i32>} : memref<1x128xf32, #tpu.memory_space<vmem>>, vector<1x128xf32>,
      %cst_40 = arith.constant 0.000000e+00 : f32
      %70 = vector.broadcast %cst_40 : f32 to vector<1x128xf32>
      %c0_41 = arith.constant 0 : index
      %c0_42 = arith.constant 0 : index
      %71 = vector.load %arg8[%c0_41, %c0_42] : memref<1x128xf32, #tpu.memory_space<vmem>>, vector<1x128xf32>
      tpu.vector_store %arg8[%c0_41, %c0_42], %70 {strides = array<i32>} : memref<1x128xf32, #tpu.memory_space<vmem>>, vector<1x128xf32>,
    } else {
    }
    %c0 = arith.constant 0 : index
    %c0_1 = arith.constant 0 : index
    %3 = vector.load %arg2[%c0, %c0_1] : memref<8x784xf32, #tpu.memory_space<vmem>>, vector<8x784xf32>
    %c0_2 = arith.constant 0 : index
    %c0_3 = arith.constant 0 : index
    %4 = vector.load %arg3[%c0_2, %c0_3] : memref<784x128xf32, #tpu.memory_space<vmem>>, vector<784x128xf32>
    %cst = arith.constant dense<0.000000e+00> : vector<8x128xf32>
    %5 = tpu.matmul %3, %4, %cst {dimension_numbers = #tpu.dot_dimension_numbers<[1], [0], [0], [1], [0, 0, 1, 1], [], []>} : vector<8x784xf32>, vector<784x128xf32>, vector<8x128xf32> -> vector<8x128xf32>
    %c192 = arith.constant 192 : index
    %c0_4 = arith.constant 0 : index
    %6 = vector.load %arg4[%c192, %c0_4] : memref<197x128xf32, #tpu.memory_space<vmem>>, vector<1x128xf32>
    %7 = vector.broadcast %6 : vector<1x128xf32> to vector<8x128xf32>
    %8 = arith.addf %5, %7 : vector<8x128xf32>
    %cst_5 = arith.constant 0.000000e+00 : f32
    %9 = vector.broadcast %cst_5 : f32 to vector<8x128xf32>
    %10 = arith.maximumf %8, %9 : vector<8x128xf32>
    %c0_6 = arith.constant 0 : index
    %c0_7 = arith.constant 0 : index
    %11 = vector.load %arg4[%c0_6, %c0_7] : memref<197x128xf32, #tpu.memory_space<vmem>>, vector<128x128xf32>
    %cst_8 = arith.constant dense<0.000000e+00> : vector<8x128xf32>
    %12 = tpu.matmul %10, %11, %cst_8 {dimension_numbers = #tpu.dot_dimension_numbers<[1], [0], [0], [1], [0, 0, 1, 1], [], []>} : vector<8x128xf32>, vector<128x128xf32>, vector<8x128xf32> -> vector<8x128xf32>
    %c193 = arith.constant 193 : index
    %c0_9 = arith.constant 0 : index
    %13 = vector.load %arg4[%c193, %c0_9] : memref<197x128xf32, #tpu.memory_space<vmem>>, vector<1x128xf32>
    %14 = vector.broadcast %13 : vector<1x128xf32> to vector<8x128xf32>
    %15 = arith.addf %12, %14 : vector<8x128xf32>
    %16 = vector.extract_strided_slice %15 {offsets = [0, 0], sizes = [8, 64], strides = [1, 1]} : vector<8x128xf32> to vector<8x64xf32>
    %17 = math.tanh %16 : vector<8x64xf32>
    %18 = vector.extract_strided_slice %15 {offsets = [0, 64], sizes = [8, 64], strides = [1, 1]} : vector<8x128xf32> to vector<8x64xf32>
    %19 = arith.negf %18 : vector<8x64xf32>
    %20 = math.exp %19 : vector<8x64xf32>
    %cst_10 = arith.constant 1.000000e+00 : f32
    %21 = vector.broadcast %cst_10 : f32 to vector<8x64xf32>
    %22 = arith.addf %21, %20 : vector<8x64xf32>
    %23 = arith.divf %21, %22 : vector<8x64xf32>
    %24 = arith.mulf %17, %23 : vector<8x64xf32>
    %c128 = arith.constant 128 : index
    %c0_11 = arith.constant 0 : index
    %25 = vector.load %arg4[%c128, %c0_11] : memref<197x128xf32, #tpu.memory_space<vmem>>, vector<64x128xf32>
    %cst_12 = arith.constant dense<0.000000e+00> : vector<8x128xf32>
    %26 = tpu.matmul %24, %25, %cst_12 {dimension_numbers = #tpu.dot_dimension_numbers<[1], [0], [0], [1], [0, 0, 1, 1], [], []>} : vector<8x64xf32>, vector<64x128xf32>, vector<8x128xf32> -> vector<8x128xf32>
    %c194 = arith.constant 194 : index
    %c0_13 = arith.constant 0 : index
    %27 = vector.load %arg4[%c194, %c0_13] : memref<197x128xf32, #tpu.memory_space<vmem>>, vector<1x128xf32>
    %28 = vector.broadcast %27 : vector<1x128xf32> to vector<8x128xf32>
    %29 = arith.addf %26, %28 : vector<8x128xf32>
    %c8_i32 = arith.constant 8 : i32
    %30 = arith.muli %arg0, %c8_i32 : i32
    %31 = tpu.iota {dimensions = array<i32: 0>} : vector<8x1xi32>
    %32 = vector.broadcast %30 : i32 to vector<8x1xi32>
    %33 = arith.addi %32, %31 : vector<8x1xi32>
    %c0_14 = arith.constant 0 : index
    %34 = memref.load %arg1[%c0_14] : memref<1xi32, #tpu.memory_space<smem>>
    %35 = vector.broadcast %34 : i32 to vector<8x1xi32>
    %36 = arith.cmpi slt, %33, %35 : vector<8x1xi32>
    %cst_15 = arith.constant -1.000000e+30 : f32
    %37 = vector.shape_cast %36 : vector<8x1xi1> to vector<8x1xi1>
    %38 = vector.broadcast %37 : vector<8x1xi1> to vector<8x128xi1>
    %39 = vector.broadcast %cst_15 : f32 to vector<8x128xf32>
    %40 = arith.select %38, %29, %39 : vector<8x128xi1>, vector<8x128xf32>
    %c0_16 = arith.constant 0 : index
    %c0_17 = arith.constant 0 : index
    %41 = vector.load %arg6[%c0_16, %c0_17] : memref<1x128xf32, #tpu.memory_space<vmem>>, vector<1x128xf32>
    %cst_18 = arith.constant dense<0xFF800000> : vector<128xf32>
    %42 = vector.multi_reduction <maximumf>, %40, %cst_18 [0] : vector<8x128xf32> to vector<128xf32>
    %43 = vector.shape_cast %42 : vector<128xf32> to vector<1x128xf32>
    %44 = arith.maximumf %41, %43 : vector<1x128xf32>
    %45 = arith.subf %41, %44 : vector<1x128xf32>
    %46 = math.exp %45 : vector<1x128xf32>
    %47 = vector.broadcast %44 : vector<1x128xf32> to vector<8x128xf32>
    %48 = arith.subf %40, %47 : vector<8x128xf32>
    %49 = math.exp %48 : vector<8x128xf32>
    %cst_19 = arith.constant 1.000000e+00 : f32
    %50 = vector.broadcast %cst_19 : f32 to vector<1x8xf32>
    %c0_20 = arith.constant 0 : index
    %c0_21 = arith.constant 0 : index
    %51 = vector.load %arg7[%c0_20, %c0_21] : memref<1x128xf32, #tpu.memory_space<vmem>>, vector<1x128xf32>
    %52 = arith.mulf %46, %51 : vector<1x128xf32>
    %cst_22 = arith.constant dense<0.000000e+00> : vector<1x128xf32>
    %53 = tpu.matmul %50, %49, %cst_22 {dimension_numbers = #tpu.dot_dimension_numbers<[1], [0], [0], [1], [0, 0, 1, 1], [], []>} : vector<1x8xf32>, vector<8x128xf32>, vector<1x128xf32> -> vector<1x128xf32>
    %54 = arith.addf %52, %53 : vector<1x128xf32>
    %c0_23 = arith.constant 0 : index
    %c0_24 = arith.constant 0 : index
    %55 = vector.load %arg7[%c0_23, %c0_24] : memref<1x128xf32, #tpu.memory_space<vmem>>, vector<1x128xf32>
    tpu.vector_store %arg7[%c0_23, %c0_24], %54 {strides = array<i32>} : memref<1x128xf32, #tpu.memory_space<vmem>>, vector<1x128xf32>,
    %c0_25 = arith.constant 0 : index
    %c0_26 = arith.constant 0 : index
    %56 = vector.load %arg8[%c0_25, %c0_26] : memref<1x128xf32, #tpu.memory_space<vmem>>, vector<1x128xf32>
    %57 = arith.mulf %46, %56 : vector<1x128xf32>
    %58 = arith.mulf %49, %10 : vector<8x128xf32>
    %cst_27 = arith.constant dense<0.000000e+00> : vector<1x128xf32>
    %59 = tpu.matmul %50, %58, %cst_27 {dimension_numbers = #tpu.dot_dimension_numbers<[1], [0], [0], [1], [0, 0, 1, 1], [], []>} : vector<1x8xf32>, vector<8x128xf32>, vector<1x128xf32> -> vector<1x128xf32>
    %60 = arith.addf %57, %59 : vector<1x128xf32>
    %c0_28 = arith.constant 0 : index
    %c0_29 = arith.constant 0 : index
    %61 = vector.load %arg8[%c0_28, %c0_29] : memref<1x128xf32, #tpu.memory_space<vmem>>, vector<1x128xf32>
    tpu.vector_store %arg8[%c0_28, %c0_29], %60 {strides = array<i32>} : memref<1x128xf32, #tpu.memory_space<vmem>>, vector<1x128xf32>,
    %c0_30 = arith.constant 0 : index
    %c0_31 = arith.constant 0 : index
    %62 = vector.load %arg6[%c0_30, %c0_31] : memref<1x128xf32, #tpu.memory_space<vmem>>, vector<1x128xf32>
    tpu.vector_store %arg6[%c0_30, %c0_31], %44 {strides = array<i32>} : memref<1x128xf32, #tpu.memory_space<vmem>>, vector<1x128xf32>,
    %c0_i32_32 = arith.constant 0 : i32
    %63 = arith.cmpi eq, %arg0, %c0_i32_32 : i32
    %64 = arith.extui %63 : i1 to i32
    %c0_i32_33 = arith.constant 0 : i32
    %65 = arith.cmpi ne, %64, %c0_i32_33 : i32
    scf.if %65 {
      %c0_34 = arith.constant 0 : index
      %c0_35 = arith.constant 0 : index
      %66 = vector.load %arg8[%c0_34, %c0_35] : memref<1x128xf32, #tpu.memory_space<vmem>>, vector<1x128xf32>
      %c0_36 = arith.constant 0 : index
      %c0_37 = arith.constant 0 : index
      %67 = vector.load %arg7[%c0_36, %c0_37] : memref<1x128xf32, #tpu.memory_space<vmem>>, vector<1x128xf32>
      %68 = arith.divf %66, %67 : vector<1x128xf32>
      %c195 = arith.constant 195 : index
      %c0_38 = arith.constant 0 : index
      %69 = vector.load %arg4[%c195, %c0_38] : memref<197x128xf32, #tpu.memory_space<vmem>>, vector<1x128xf32>
      %70 = arith.mulf %68, %69 : vector<1x128xf32>
      %cst_39 = arith.constant dense<0.000000e+00> : vector<1xf32>
      %71 = vector.multi_reduction <add>, %70, %cst_39 [1] : vector<1x128xf32> to vector<1xf32>
      %72 = vector.shape_cast %71 : vector<1xf32> to vector<1x1xf32>
      %c196 = arith.constant 196 : index
      %c0_40 = arith.constant 0 : index
      %73 = vector.load %arg4[%c196, %c0_40] : memref<197x128xf32, #tpu.memory_space<vmem>>, vector<1x1xf32>
      %74 = arith.addf %72, %73 : vector<1x1xf32>
      %75 = arith.negf %74 : vector<1x1xf32>
      %76 = math.exp %75 : vector<1x1xf32>
      %cst_41 = arith.constant 1.000000e+00 : f32
      %77 = vector.broadcast %cst_41 : f32 to vector<1x1xf32>
      %78 = arith.addf %77, %76 : vector<1x1xf32>
      %79 = arith.divf %77, %78 : vector<1x1xf32>
      %c0_42 = arith.constant 0 : index
      %c0_43 = arith.constant 0 : index
      %80 = vector.load %arg5[%c0_42, %c0_43] : memref<1x1xf32, #tpu.memory_space<vmem>>, vector<1x1xf32>
      tpu.vector_store %arg5[%c0_42, %c0_43], %79 {strides = array<i32>} : memref<1x1xf32, #tpu.memory_space<vmem>>, vector<1x1xf32>,
    } else {
    }
    return
  }
  func.func @transform_0(%arg0: i32, %arg1: memref<1xi32, #tpu.memory_space<smem>>) -> (i32, i32) {
    %c0_i32 = arith.constant 0 : i32
    %c0_i32_0 = arith.constant 0 : i32
    return %arg0, %c0_i32 : i32, i32
  }
  func.func @transform_1(%arg0: i32, %arg1: memref<1xi32, #tpu.memory_space<smem>>) -> (i32, i32) {
    %c0_i32 = arith.constant 0 : i32
    %c0_i32_0 = arith.constant 0 : i32
    %c0_i32_1 = arith.constant 0 : i32
    return %c0_i32, %c0_i32_0 : i32, i32
  }
  func.func @transform_2(%arg0: i32, %arg1: memref<1xi32, #tpu.memory_space<smem>>) -> (i32, i32) {
    %c0_i32 = arith.constant 0 : i32
    %c0_i32_0 = arith.constant 0 : i32
    %c0_i32_1 = arith.constant 0 : i32
    return %c0_i32, %c0_i32_0 : i32, i32
  }
  func.func @transform_3(%arg0: i32, %arg1: memref<1xi32, #tpu.memory_space<smem>>) -> (i32, i32) {
    %c0_i32 = arith.constant 0 : i32
    %c0_i32_0 = arith.constant 0 : i32
    %c0_i32_1 = arith.constant 0 : i32
    return %c0_i32, %c0_i32_0 : i32, i32
  }
}

</mosaic_0001>

<bundles_post_ra>
// kernel: tpu_custom_call.1
= control target key start
LH: loop header
LB: loop body
LE: loop exit
PB: predicated region body
PF: predicated region fallthrough
CT: control target
= control target key end

     0   :  { %10 = vsyncpa [#allocation8], 0  ;;  %s1475_s0 = inlined_call_operand.<no memory space> [shape: s32[1], index: 0, kind: input, shape index: {}]   ;;  %s1476_s1 = inlined_call_operand.hbm [shape: f32[8,784], index: 1, kind: input, shape index: {}]   ;;  %s1477_s2 = inlined_call_operand.hbm [shape: f32[784,128], index: 2, kind: input, shape index: {}]   ;;  %s1478_s3 = inlined_call_operand.hbm [shape: f32[197,128], index: 3, kind: input, shape index: {}]   ;;  %s1479_s4 = inlined_call_operand.hbm [shape: f32[1,1], index: 4, kind: output, shape index: {}]  }
   0x1   :  { %11 = vsyncpa [#allocation11], 0 }
   0x2   :  { %12 = vsyncpa [#allocation9], 0  ;;  %s1347_s15 = smov [#allocation10]   ;;  %s1253_s19 = scalar_lea.hbm %s1477_s2, 12544 }
   0x3   :  { %s28_s16 = sshll.u32 %s1347_s15, 4  ;;  %p1254_p0 = scmp.ne.s32.totalorder %s1477_s2, %s1253_s19  ;;  %s29_s16 = int_to_ptr.vmem [resolvable:$true] %s28_s16 }
   0x4   :  { %p1257_p1 = scmp.lt.u32.totalorder %s1253_s19, %s1477_s2 }
   0x6   :  { %p1259_p2 = pnand %p1257_p1, %p1254_p0 }
   0x8   :  { %1262 = shalt.err (!%p1259_p2)
}
   0x9   :  { %s1263_s24 = scalar_lea.vmem %s29_s16, 12544  ;;  %p1268_p4 = scmp.lt.s32.totalorder %s29_s16, %s29_s16 }
   0xa   :  { %p1264_p3 = scmp.ne.s32.totalorder %s29_s16, %s1263_s24  ;;  %p1269_p5 = scmp.lt.s32.totalorder %s1263_s24, %s1263_s24 }
   0xc   :  { %p1270_p6 = por %p1269_p5, %p1268_p4 }
   0xe   :  { %p1271_p7 = pnand %p1270_p6, %p1264_p3 }
  0x10   :  { %1274 = shalt.err (!%p1271_p7)
}
  0x11   :  { %s1348_s25 = smov 128   ;;  %s1349_s26 = smov 8  }
  0x12   :  { %34 = dma.hbm_to_vmem [thread:$0]  %s1477_s2, 12544, %s29_s16, [#allocation11], %s1348_s25, %s1348_s25, %s1349_s26  }
  0x13   :  { %s1350_s29 = smov [#allocation7]   ;;  %s1351_s5 = smov [#allocation12]  }
  0x14   :  { %s19_s30 = sshll.u32 %s1350_s29, 4  ;;  %s40_s6 = sshll.u32 %s1351_s5, 4  ;;  %s20_s30 = int_to_ptr.vmem [resolvable:$true] %s19_s30  ;;  %s41_s6 = int_to_ptr.vmem [resolvable:$true] %s40_s6 }
  0x15   :  { %s1275_s9 = scalar_lea.hbm %s1476_s1, 896 }
  0x16   :  { %p1276_p8 = scmp.ne.s32.totalorder %s1476_s1, %s1275_s9  ;;  %p1279_p9 = scmp.lt.u32.totalorder %s1275_s9, %s1476_s1 }
  0x18   :  { %p1281_p10 = pnand %p1279_p9, %p1276_p8 }
  0x1a   :  { %1284 = shalt.err (!%p1281_p10)
}
  0x1b   :  { %s1285_s2 = scalar_lea.vmem %s20_s30, 896  ;;  %p1290_p12 = scmp.lt.s32.totalorder %s20_s30, %s20_s30 }
  0x1c   :  { %p1286_p11 = scmp.ne.s32.totalorder %s20_s30, %s1285_s2  ;;  %p1291_p13 = scmp.lt.s32.totalorder %s1285_s2, %s1285_s2 }
  0x1e   :  { %p1292_p0 = por %p1291_p13, %p1290_p12 }
  0x20   :  { %p1293_p1 = pnand %p1292_p0, %p1286_p11 }
  0x22   :  { %1296 = shalt.err (!%p1293_p1)
}
  0x23   :  { %22 = dma.hbm_to_vmem [thread:$0]  %s1476_s1, 896, %s20_s30, [#allocation8]  }
  0x24   :  { %s1297_s18 = scalar_lea.hbm %s1478_s3, 3200 }
  0x25   :  { %p1298_p2 = scmp.ne.s32.totalorder %s1478_s3, %s1297_s18  ;;  %p1301_p3 = scmp.lt.u32.totalorder %s1297_s18, %s1478_s3 }
  0x27   :  { %p1303_p4 = pnand %p1301_p3, %p1298_p2 }
  0x29   :  { %1306 = shalt.err (!%p1303_p4)
}
  0x2a   :  { %s1307_s23 = scalar_lea.vmem %s41_s6, 3200  ;;  %p1312_p6 = scmp.lt.s32.totalorder %s41_s6, %s41_s6 }
  0x2b   :  { %p1308_p5 = scmp.ne.s32.totalorder %s41_s6, %s1307_s23  ;;  %p1313_p7 = scmp.lt.s32.totalorder %s1307_s23, %s1307_s23 }
  0x2d   :  { %p1314_p8 = por %p1313_p7, %p1312_p6 }
  0x2f   :  { %p1315_p9 = pnand %p1314_p8, %p1308_p5 }
  0x31   :  { %1318 = shalt.err (!%p1315_p9)
}
  0x32   :  { %46 = dma.hbm_to_vmem [thread:$0]  %s1478_s3, 3200, %s41_s6, [#allocation11], %s1348_s25, %s1348_s25, %s1349_s26  }
  0x33   :  { %1341 = dma.done.wait [#allocation8], 896  }
  0x34   :  { %1342 = vsyncadd [#allocation8], 4294966400 }
  0x35   :  { %1343 = dma.done.wait [#allocation11], 15744  }
  0x36   :  { %1344 = vsyncadd [#allocation11], 4294951552  ;;  %v1352_v0 = vmov 0.0   ;;  %v86_v1 = vld [vmem:[#allocation10 + $0x80] sm:$0xff]  ;;  %v87_v2 = vld [vmem:[#allocation10 + $0x88] sm:$0xff]  ;;  %vm1354_vm0 = vmmov 0  }
  0x37   :  { %61 = vst [vmem:[#allocation3] sm:$0x1] %v1352_v0  ;;  %62 = vst [vmem:[#allocation4] sm:$0x1] %v1352_v0  ;;  %v70_v3 = vld [vmem:[#allocation10] sm:$0xff]  ;;  %v1090_v4 = vpack.c.bf16 %v87_v2, %v86_v1  ;;  %v71_v5 = vld [vmem:[#allocation10 + $0x8] sm:$0xff] }
  0x38   :  { %v118_v6 = vld [vmem:[#allocation10 + $0x180] sm:$0xff]  ;;  %v119_v7 = vld [vmem:[#allocation10 + $0x188] sm:$0xff]  ;;  %v1092_v8 = vpack.c.bf16 %v71_v5, %v70_v3  ;;  %v88_v12 = vld [vmem:[#allocation10 + $0x90] sm:$0xff]  ;;  %vm173_vm1 = vcmask 130048   ;;  %s1356_s3 = smov 64   ;;  %vm574_vm2 = vcmask 523264  }
  0x39   :  { %v1122_v9 = vpack.c.bf16 %v119_v7, %v118_v6  ;;  %v102_v10 = vld [vmem:[#allocation10 + $0x100] sm:$0xff]  ;;  %v103_v11 = vld [vmem:[#allocation10 + $0x108] sm:$0xff]  ;;  %1091 = vmatprep.subr.bf16.mxu0 %v1090_v4  ;;  %v89_v14 = vld [vmem:[#allocation10 + $0x98] sm:$0xff]  ;;  %vm681_vm4 = vcmask 64512   ;;  %vm842_vm5 = vcmask 1040384   ;;  %vm854_vm6 = vcmask 0  }
  0x3a   :  { %v1124_v13 = vpack.c.bf16 %v103_v11, %v102_v10  ;;  %v72_v15 = vld [vmem:[#allocation10 + $0x10] sm:$0xff]  ;;  %v73_v16 = vld [vmem:[#allocation10 + $0x18] sm:$0xff]  ;;  %1093 = vmatpush3.bf16.msra.mxu0 %v1092_v8  ;;  %v1094_v17 = vpack.c.bf16 %v89_v14, %v88_v12  ;;  %v90_v24 = vld [vmem:[#allocation10 + $0xa0] sm:$0xff] }
  0x3b   :  { %1123 = vmatprep.subr.bf16.mxu1 %v1122_v9  ;;  %v1096_v18 = vpack.c.bf16 %v73_v16, %v72_v15  ;;  %v120_v19 = vld [vmem:[#allocation10 + $0x190] sm:$0xff]  ;;  %v121_v20 = vld [vmem:[#allocation10 + $0x198] sm:$0xff]  ;;  %v91_v25 = vld [vmem:[#allocation10 + $0xa8] sm:$0xff] }
  0x3c   :  { %v104_v21 = vld [vmem:[#allocation10 + $0x110] sm:$0xff]  ;;  %1125 = vmatpush3.bf16.msra.mxu1 %v1124_v13  ;;  %v1126_v22 = vpack.c.bf16 %v121_v20, %v120_v19  ;;  %v105_v23 = vld [vmem:[#allocation10 + $0x118] sm:$0xff]  ;;  %1095 = vmatprep.subr.bf16.mxu0 %v1094_v17  ;;  %v1098_v27 = vpack.c.bf16 %v91_v25, %v90_v24  ;;  %v74_v28 = vld [vmem:[#allocation10 + $0x20] sm:$0xff] }
  0x3d   :  { %v1128_v26 = vpack.c.bf16 %v105_v23, %v104_v21  ;;  %v75_v29 = vld [vmem:[#allocation10 + $0x28] sm:$0xff]  ;;  %v122_v30 = vld [vmem:[#allocation10 + $0x1a0] sm:$0xff]  ;;  %v92_v36 = vld [vmem:[#allocation10 + $0xb0] sm:$0xff] }
  0x3e   :  { %1127 = vmatprep.subr.bf16.mxu1 %v1126_v22  ;;  %v123_v31 = vld [vmem:[#allocation10 + $0x1a8] sm:$0xff]  ;;  %v106_v32 = vld [vmem:[#allocation10 + $0x120] sm:$0xff]  ;;  %1097 = vmatpush3.bf16.msra.mxu0 %v1096_v18  ;;  %v1100_v34 = vpack.c.bf16 %v75_v29, %v74_v28  ;;  %v93_v37 = vld [vmem:[#allocation10 + $0xb8] sm:$0xff] }
  0x3f   :  { %v107_v33 = vld [vmem:[#allocation10 + $0x128] sm:$0xff]  ;;  %v1130_v35 = vpack.c.bf16 %v123_v31, %v122_v30  ;;  %v76_v38 = vld [vmem:[#allocation10 + $0x30] sm:$0xff]  ;;  %1099 = vmatprep.subr.bf16.mxu0 %v1098_v27  ;;  %v1102_v40 = vpack.c.bf16 %v93_v37, %v92_v36  ;;  %v77_v41 = vld [vmem:[#allocation10 + $0x38] sm:$0xff] }
  0x40   :  { %1129 = vmatpush3.bf16.msra.mxu1 %v1128_v26  ;;  %v1132_v39 = vpack.c.bf16 %v107_v33, %v106_v32  ;;  %v124_v42 = vld [vmem:[#allocation10 + $0x1b0] sm:$0xff]  ;;  %v125_v43 = vld [vmem:[#allocation10 + $0x1b8] sm:$0xff]  ;;  %v94_v47 = vld [vmem:[#allocation10 + $0xc0] sm:$0xff]  ;;  %v1104_v49 = vpack.c.bf16 %v77_v41, %v76_v38 }
  0x41   :  { %1131 = vmatprep.subr.bf16.mxu1 %v1130_v35  ;;  %v1134_v44 = vpack.c.bf16 %v125_v43, %v124_v42  ;;  %v108_v45 = vld [vmem:[#allocation10 + $0x130] sm:$0xff]  ;;  %v109_v46 = vld [vmem:[#allocation10 + $0x138] sm:$0xff]  ;;  %v95_v48 = vld [vmem:[#allocation10 + $0xc8] sm:$0xff] }
  0x42   :  { %1101 = vmatpush3.bf16.msra.mxu0 %v1100_v34  ;;  %v126_v50 = vld [vmem:[#allocation10 + $0x1c0] sm:$0xff]  ;;  %v127_v51 = vld [vmem:[#allocation10 + $0x1c8] sm:$0xff]  ;;  %v1136_v52 = vpack.c.bf16 %v109_v46, %v108_v45  ;;  %v1106_v53 = vpack.c.bf16 %v95_v48, %v94_v47  ;;  %v96_v59 = vld [vmem:[#allocation10 + $0xd0] sm:$0xff] }
  0x43   :  { %1103 = vmatprep.subr.bf16.mxu0 %v1102_v40  ;;  %v78_v54 = vld [vmem:[#allocation10 + $0x40] sm:$0xff]  ;;  %v79_v55 = vld [vmem:[#allocation10 + $0x48] sm:$0xff]  ;;  %v1138_v57 = vpack.c.bf16 %v127_v51, %v126_v50  ;;  %v97_v60 = vld [vmem:[#allocation10 + $0xd8] sm:$0xff] }
  0x44   :  { %1133 = vmatpush3.bf16.msra.mxu1 %v1132_v39  ;;  %v110_v56 = vld [vmem:[#allocation10 + $0x140] sm:$0xff]  ;;  %v111_v58 = vld [vmem:[#allocation10 + $0x148] sm:$0xff]  ;;  %v128_v61 = vld [vmem:[#allocation10 + $0x1d0] sm:$0xff]  ;;  %v1108_v63 = vpack.c.bf16 %v79_v55, %v78_v54  ;;  %v1110_v2 = vpack.c.bf16 %v97_v60, %v96_v59 }
  0x45   :  { %1135 = vmatprep.subr.bf16.mxu1 %v1134_v44  ;;  %v129_v62 = vld [vmem:[#allocation10 + $0x1d8] sm:$0xff]  ;;  %v1140_v1 = vpack.c.bf16 %v111_v58, %v110_v56  ;;  %v80_v3 = vld [vmem:[#allocation10 + $0x50] sm:$0xff]  ;;  %v98_v8 = vld [vmem:[#allocation10 + $0xe0] sm:$0xff] }
  0x46   :  { %1105 = vmatpush3.bf16.msra.mxu0 %v1104_v49  ;;  %v81_v4 = vld [vmem:[#allocation10 + $0x58] sm:$0xff]  ;;  %v112_v5 = vld [vmem:[#allocation10 + $0x150] sm:$0xff]  ;;  %v1142_v6 = vpack.c.bf16 %v129_v62, %v128_v61  ;;  %v99_v9 = vld [vmem:[#allocation10 + $0xe8] sm:$0xff] }
  0x47   :  { %1107 = vmatprep.subr.bf16.mxu0 %v1106_v53  ;;  %v113_v7 = vld [vmem:[#allocation10 + $0x158] sm:$0xff]  ;;  %v130_v10 = vld [vmem:[#allocation10 + $0x1e0] sm:$0xff]  ;;  %v131_v11 = vld [vmem:[#allocation10 + $0x1e8] sm:$0xff]  ;;  %v1112_v12 = vpack.c.bf16 %v81_v4, %v80_v3  ;;  %v1114_v16 = vpack.c.bf16 %v99_v9, %v98_v8 }
  0x48   :  { %1137 = vmatpush3.bf16.msra.mxu1 %v1136_v52  ;;  %v82_v13 = vld [vmem:[#allocation10 + $0x60] sm:$0xff]  ;;  %v64_v14 = vld [vmem:[#allocation7 + $0x8] sm:$0xff]  ;;  %v1144_v15 = vpack.c.bf16 %v113_v7, %v112_v5  ;;  %v83_v17 = vld [vmem:[#allocation10 + $0x68] sm:$0xff]  ;;  %v1146_v20 = vpack.c.bf16 %v131_v11, %v130_v10  ;;  %v1353_v52 = vmov 0.0|0.0  }
  0x49   :  { %1139 = vmatprep.subr.bf16.mxu1 %v1138_v57  ;;  %v114_v18 = vld [vmem:[#allocation10 + $0x160] sm:$0xff]  ;;  %v115_v19 = vld [vmem:[#allocation10 + $0x168] sm:$0xff]  ;;  %v100_v21 = vld [vmem:[#allocation10 + $0xf0] sm:$0xff]  ;;  %241 = vmatprep.mubr.f32.mxu0 %v64_v14  ;;  %v1116_v26 = vpack.c.bf16 %v83_v17, %v82_v13 }
  0x4a   :  { %1109 = vmatpush3.bf16.msra.mxu0 %v1108_v63  ;;  %v101_v22 = vld [vmem:[#allocation10 + $0xf8] sm:$0xff]  ;;  %v66_v23 = vld [vmem:[#allocation7 + $0x18] sm:$0xff]  ;;  %v132_v24 = vld [vmem:[#allocation10 + $0x1f0] sm:$0xff]  ;;  %v1148_v27 = vpack.c.bf16 %v115_v19, %v114_v18 }
  0x4b   :  { %1111 = vmatprep.subr.bf16.mxu0 %v1110_v2  ;;  %v133_v25 = vld [vmem:[#allocation10 + $0x1f8] sm:$0xff]  ;;  %311 = vmatprep.mubr.f32.mxu1 %v66_v23  ;;  %v1118_v28 = vpack.c.bf16 %v101_v22, %v100_v21  ;;  %v84_v29 = vld [vmem:[#allocation10 + $0x70] sm:$0xff]  ;;  %v150_v34 = vld [vmem:[#allocation10 + $0x280] sm:$0xff] }
  0x4c   :  { %1141 = vmatpush3.bf16.msra.mxu1 %v1140_v1  ;;  %v85_v30 = vld [vmem:[#allocation10 + $0x78] sm:$0xff]  ;;  %v116_v31 = vld [vmem:[#allocation10 + $0x170] sm:$0xff]  ;;  %v1150_v32 = vpack.c.bf16 %v133_v25, %v132_v24  ;;  %v151_v35 = vld [vmem:[#allocation10 + $0x288] sm:$0xff] }
  0x4d   :  { %1143 = vmatprep.subr.bf16.mxu1 %v1142_v6  ;;  %v117_v33 = vld [vmem:[#allocation10 + $0x178] sm:$0xff]  ;;  %v1120_v36 = vpack.c.bf16 %v85_v30, %v84_v29  ;;  %v1154_v38 = vpack.c.bf16 %v151_v35, %v150_v34  ;;  %v134_v39 = vld [vmem:[#allocation10 + $0x200] sm:$0xff]  ;;  %v135_v40 = vld [vmem:[#allocation10 + $0x208] sm:$0xff] }
  0x4e   :  { %1113 = vmatpush3.bf16.msra.mxu0 %v1112_v12  ;;  %v1152_v37 = vpack.c.bf16 %v117_v33, %v116_v31  ;;  %v152_v41 = vld [vmem:[#allocation10 + $0x290] sm:$0xff]  ;;  %v153_v42 = vld [vmem:[#allocation10 + $0x298] sm:$0xff]  ;;  %v63_v43 = vld [vmem:[#allocation7] sm:$0xff]  ;;  %v1156_v44 = vpack.c.bf16 %v135_v40, %v134_v39 }
  0x4f   :  { %1115 = vmatprep.subr.bf16.mxu0 %v1114_v16  ;;  %v65_v45 = vld [vmem:[#allocation7 + $0x10] sm:$0xff]  ;;  %v136_v46 = vld [vmem:[#allocation10 + $0x210] sm:$0xff]  ;;  %v1158_v47 = vpack.c.bf16 %v153_v42, %v152_v41  ;;  %v154_v49 = vld [vmem:[#allocation10 + $0x2a0] sm:$0xff] }
  0x50   :  { %1145 = vmatpush3.bf16.msra.mxu1 %v1144_v15  ;;  %v137_v48 = vld [vmem:[#allocation10 + $0x218] sm:$0xff]  ;;  %v155_v50 = vld [vmem:[#allocation10 + $0x2a8] sm:$0xff]  ;;  %v68_v51 = vld [vmem:[#allocation7 + $0x28] sm:$0xff] }
  0x51   :  { %1147 = vmatprep.subr.bf16.mxu1 %v1146_v20  ;;  %v166_v53 = vld [vmem:[#allocation10 + $0x300] sm:$0xff]  ;;  %v167_v54 = vld [vmem:[#allocation10 + $0x308] sm:$0xff]  ;;  %v1160_v56 = vpack.c.bf16 %v137_v48, %v136_v46  ;;  %v1162_v57 = vpack.c.bf16 %v155_v50, %v154_v49  ;;  %v156_v60 = vld [vmem:[#allocation10 + $0x2b0] sm:$0xff] }
  0x52   :  { %1117 = vmatpush3.bf16.msra.mxu0 %v1116_v26  ;;  %v1187_v55 = vpack.c.bf16 %v167_v54, %v166_v53  ;;  %v138_v58 = vld [vmem:[#allocation10 + $0x220] sm:$0xff]  ;;  %v139_v59 = vld [vmem:[#allocation10 + $0x228] sm:$0xff]  ;;  %v157_v61 = vld [vmem:[#allocation10 + $0x2b8] sm:$0xff] }
  0x53   :  { %1119 = vmatprep.subr.bf16.mxu0 %v1118_v28  ;;  %v69_v62 = vld [vmem:[#allocation7 + $0x30] sm:$0xff]  ;;  %v1164_v63 = vpack.c.bf16 %v139_v59, %v138_v58  ;;  %v1166_v1 = vpack.c.bf16 %v157_v61, %v156_v60  ;;  %v140_v2 = vld [vmem:[#allocation10 + $0x230] sm:$0xff]  ;;  %v158_v4 = vld [vmem:[#allocation10 + $0x2c0] sm:$0xff] }
  0x54   :  { %1149 = vmatpush3.bf16.msra.mxu1 %v1148_v27  ;;  %v141_v3 = vld [vmem:[#allocation10 + $0x238] sm:$0xff]  ;;  %v159_v5 = vld [vmem:[#allocation10 + $0x2c8] sm:$0xff]  ;;  %v142_v8 = vld [vmem:[#allocation10 + $0x240] sm:$0xff] }
  0x55   :  { %1151 = vmatprep.subr.bf16.mxu1 %v1150_v32  ;;  %v1168_v6 = vpack.c.bf16 %v141_v3, %v140_v2  ;;  %v1170_v7 = vpack.c.bf16 %v159_v5, %v158_v4  ;;  %v143_v9 = vld [vmem:[#allocation10 + $0x248] sm:$0xff]  ;;  %v160_v10 = vld [vmem:[#allocation10 + $0x2d0] sm:$0xff]  ;;  %v161_v11 = vld [vmem:[#allocation10 + $0x2d8] sm:$0xff] }
  0x56   :  { %1121 = vmatpush3.bf16.msra.mxu0 %v1120_v36  ;;  %v1172_v12 = vpack.c.bf16 %v143_v9, %v142_v8  ;;  %v1174_v13 = vpack.c.bf16 %v161_v11, %v160_v10  ;;  %v144_v14 = vld [vmem:[#allocation10 + $0x250] sm:$0xff]  ;;  %v145_v15 = vld [vmem:[#allocation10 + $0x258] sm:$0xff]  ;;  %v162_v16 = vld [vmem:[#allocation10 + $0x2e0] sm:$0xff] }
  0x57   :  { %1155 = vmatprep.subr.bf16.mxu0 %v1154_v38  ;;  %v163_v17 = vld [vmem:[#allocation10 + $0x2e8] sm:$0xff]  ;;  %v1176_v18 = vpack.c.bf16 %v145_v15, %v144_v14  ;;  %v146_v20 = vld [vmem:[#allocation10 + $0x260] sm:$0xff]  ;;  %v164_v22 = vld [vmem:[#allocation10 + $0x2f0] sm:$0xff] }
  0x58   :  { %1153 = vmatpush3.bf16.msra.mxu1 %v1152_v37  ;;  %v1178_v19 = vpack.c.bf16 %v163_v17, %v162_v16  ;;  %v147_v21 = vld [vmem:[#allocation10 + $0x268] sm:$0xff]  ;;  %v165_v23 = vld [vmem:[#allocation10 + $0x2f8] sm:$0xff]  ;;  %v148_v26 = vld [vmem:[#allocation10 + $0x270] sm:$0xff] }
  0x59   :  { %1186 = vmatprep.subr.bf16.mxu1 %v1353_v52  ;;  %242 = vmatmul.mubr.f32.vlgmr.msra.gmra.mrb[0].mxu0 %v63_v43  ;;  %v1180_v24 = vpack.c.bf16 %v147_v21, %v146_v20  ;;  %v1182_v25 = vpack.c.bf16 %v165_v23, %v164_v22  ;;  %v149_v27 = vld [vmem:[#allocation10 + $0x278] sm:$0xff]  ;;  %v67_v29 = vld [vmem:[#allocation7 + $0x20] sm:$0xff]  ;;  %v458_v30 = vld [vmem:[#allocation12] sm:$0xff] }
  0x5a   :  { %1157 = vmatpush3.bf16.msra.mxu0 %v1156_v44  ;;  %381 = vmatprep.mubr.f32.mxu0 %v68_v51  ;;  %v1184_v28 = vpack.c.bf16 %v149_v27, %v148_v26  ;;  %v459_v31 = vld [vmem:[#allocation12 + $0x8] sm:$0xff]  ;;  %v460_v32 = vld [vmem:[#allocation12 + $0x10] sm:$0xff]  ;;  %v461_v34 = vld [vmem:[#allocation12 + $0x18] sm:$0xff] }
  0x5b   :  { %312 = vmatmul.mubr.f32.vlgmr.msra.gmra.mrb[0].mxu1 %v65_v45  ;;  %1159 = vmatprep.subr.bf16.mxu0 %v1158_v47  ;;  %v1190_v33 = vpack.c.bf16 %v459_v31, %v458_v30  ;;  %v1193_v35 = vpack.c.bf16 %v461_v34, %v460_v32  ;;  %v462_v36 = vld [vmem:[#allocation12 + $0x20] sm:$0xff]  ;;  %v463_v37 = vld [vmem:[#allocation12 + $0x28] sm:$0xff]  ;;  %v464_v39 = vld [vmem:[#allocation12 + $0x30] sm:$0xff]  ;;  %v649_v32 = vlaneseq  ;;  %v654_v34 = vstv %s1475_s0  ;;  %s1358_s0 = smov [#allocation13]  }
  0x5c   :  { %1188 = vmatpush3.bf16.msra.mxu1 %v1187_v55  ;;  %1023 = vmatprep.mubr.msk.f32.mxu1 %vm1354_vm0, %v1352_v0  ;;  %v1196_v38 = vpack.c.bf16 %v463_v37, %v462_v36  ;;  %v465_v40 = vld [vmem:[#allocation12 + $0x38] sm:$0xff]  ;;  %v466_v42 = vld [vmem:[#allocation12 + $0x40] sm:$0xff]  ;;  %v467_v43 = vld [vmem:[#allocation12 + $0x48] sm:$0xff]  ;;  %s862_s27 = sshll.u32 %s1358_s0, 4  ;;  %s863_s27 = int_to_ptr.vmem [resolvable:$true] %s862_s27 }
  0x5d   :  { %1189 = vmatprep.subr.bf16.mxu1 %v1353_v52  ;;  %v1199_v41 = vpack.c.bf16 %v465_v40, %v464_v39  ;;  %v1202_v44 = vpack.c.bf16 %v467_v43, %v466_v42  ;;  %v468_v45 = vld [vmem:[#allocation12 + $0x50] sm:$0xff]  ;;  %v469_v46 = vld [vmem:[#allocation12 + $0x58] sm:$0xff]  ;;  %v470_v48 = vld [vmem:[#allocation12 + $0x60] sm:$0xff]  ;;  %s1319_s28 = scalar_lea.vmem %s863_s27, 16  ;;  %s1323_s29 = scalar_lea.vmem %s863_s27, 32 }
  0x5e   :  { %1161 = vmatpush3.bf16.msra.mxu0 %v1160_v56  ;;  %v1205_v47 = vpack.c.bf16 %v469_v46, %v468_v45  ;;  %v471_v49 = vld [vmem:[#allocation12 + $0x68] sm:$0xff]  ;;  %v472_v51 = vld [vmem:[#allocation12 + $0x70] sm:$0xff]  ;;  %v473_v53 = vld [vmem:[#allocation12 + $0x78] sm:$0xff]  ;;  %p1320_p10 = scmp.ne.s32.totalorder %s863_s27, %s1319_s28  ;;  %p1324_p11 = scmp.lt.s32.totalorder %s863_s27, %s863_s27 }
  0x5f   :  { %1163 = vmatprep.subr.bf16.mxu0 %v1162_v57  ;;  %1024 = vmatmul.mubr.msk.f32.vlgmr.msra.gmra.mrb[2].mxu1 %vm173_vm1, %v69_v62  ;;  %v1208_v50 = vpack.c.bf16 %v471_v49, %v470_v48  ;;  %v1211_v54 = vpack.c.bf16 %v473_v53, %v472_v51  ;;  %v872_v56 = vld [vmem:[#allocation12 + $0xc0] ss:$0 sm:$0xff]  ;;  %v562_v10 = vld [vmem:[#allocation12 + $0x88] sm:$0xff]  ;;  %v563_v11 = vld [vmem:[#allocation12 + $0x90] sm:$0xff]  ;;  %p1325_p12 = scmp.lt.s32.totalorder %s1323_s29, %s1319_s28 }
  0x60   :  { %1058 = vmatprep.mubr.msk.f32.mxu1 %vm1354_vm0, %v1352_v0  ;;  %1191 = vmatpush3.bf16.msra.mxu1 %v1190_v33  ;;  %v561_v9 = vld [vmem:[#allocation12 + $0x80] sm:$0xff]  ;;  %v566_v16 = vld [vmem:[#allocation12 + $0xa8] sm:$0xff]  ;;  %v650_v33 = vshrl.u32 %v649_v32, 7 }
  0x61   :  { %1192 = vmatprep.subr.bf16.mxu1 %v1353_v52  ;;  %v565_v15 = vld [vmem:[#allocation12 + $0xa0] sm:$0xff]  ;;  %p1326_p13 = por %p1325_p12, %p1324_p11 }
  0x62   :  { %1165 = vmatpush3.bf16.msra.mxu0 %v1164_v63  ;;  %v1220_v17 = vpack.c.bf16 %v566_v16, %v565_v15  ;;  %v874_v21 = vld [vmem:[#allocation12 + $0xc1] ss:$0 sm:$0xff]  ;;  %vm655_vm3 = vcmp.lt.s32.totalorder %v650_v33, %v654_v34 }
  0x63   :  { %1167 = vmatprep.subr.bf16.mxu0 %v1166_v1  ;;  %p1327_p0 = pnand %p1326_p13, %p1320_p10 }
  0x64   :  { %1194 = vmatpush3.bf16.msra.mxu1 %v1193_v35  ;;  %v876_v35 = vld [vmem:[#allocation12 + $0xc2] ss:$0 sm:$0xff] }
  0x65   :  { %1195 = vmatprep.subr.bf16.mxu1 %v1353_v52 }
  0x66   :  { %1169 = vmatpush3.bf16.msra.mxu0 %v1168_v6 }
  0x67   :  { %1171 = vmatprep.subr.bf16.mxu0 %v1170_v7 }
  0x68   :  { %1197 = vmatpush3.bf16.msra.mxu1 %v1196_v38 }
  0x69   :  { %1198 = vmatprep.subr.bf16.mxu1 %v1353_v52 }
  0x6a   :  { %1173 = vmatpush3.bf16.msra.mxu0 %v1172_v12  ;;  %v1214_v12 = vpack.c.bf16 %v562_v10, %v561_v9 }
  0x6b   :  { %1175 = vmatprep.subr.bf16.mxu0 %v1174_v13  ;;  %v564_v13 = vld [vmem:[#allocation12 + $0x98] sm:$0xff] }
  0x6c   :  { %1200 = vmatpush3.bf16.msra.mxu1 %v1199_v41  ;;  %v1217_v14 = vpack.c.bf16 %v564_v13, %v563_v11 }
  0x6d   :  { %1201 = vmatprep.subr.bf16.mxu1 %v1353_v52 }
  0x6e   :  { %1177 = vmatpush3.bf16.msra.mxu0 %v1176_v18  ;;  %v567_v18 = vld [vmem:[#allocation12 + $0xb0] sm:$0xff] }
  0x6f   :  { %1179 = vmatprep.subr.bf16.mxu0 %v1178_v19  ;;  %v568_v19 = vld [vmem:[#allocation12 + $0xb8] sm:$0xff] }
  0x70   :  { %1203 = vmatpush3.bf16.msra.mxu1 %v1202_v44  ;;  %v1223_v20 = vpack.c.bf16 %v568_v19, %v567_v18 }
  0x71   :  { %1204 = vmatprep.subr.bf16.mxu1 %v1353_v52 }
  0x72   :  { %1181 = vmatpush3.bf16.msra.mxu0 %v1180_v24 }
  0x73   :  { %1183 = vmatprep.subr.bf16.mxu0 %v1182_v25 }
  0x74   :  { %1206 = vmatpush3.bf16.msra.mxu1 %v1205_v47  ;;  %v673_v47 = vsub.s32 0, %v650_v33 }
  0x75   :  { %1207 = vmatprep.subr.bf16.mxu1 %v1353_v52 }
  0x76   :  { %1185 = vmatpush3.bf16.msra.mxu0 %v1184_v28  ;;  %v1355_v28 = vmov -1e+30  }
  0x77   :  { %1213 = vmatprep.subr.bf16.mxu0 %v1353_v52  ;;  %60 = vst [vmem:[#allocation2] sm:$0x1] %v1355_v28 }
  0x78   :  { %1209 = vmatpush3.bf16.msra.mxu1 %v1208_v50 }
  0x79   :  { %382 = vmatmul.mubr.f32.vlgmr.msra.gmra.mrb[2].mxu0 %v67_v29  ;;  %1210 = vmatprep.subr.bf16.mxu1 %v1353_v52 }
  0x7a   :  { %1077 = vmatprep.mubr.msk.f32.mxu0 %vm1354_vm0, %v1352_v0  ;;  %1215 = vmatpush3.bf16.msra.mxu0 %v1214_v12  ;;  %v846_v12 = vld [vmem:[#allocation12 + $0xc4] sm:$0x1] }
  0x7b   :  { %1216 = vmatprep.subr.bf16.mxu0 %v1353_v52 }
  0x7c   :  { %1212 = vmatpush3.bf16.msra.mxu1 %v1211_v54 }
  0x7d   :  { %1080 = vmatprep.subr.mxu1 %v1352_v0 }
  0x7e   :  { %1218 = vmatpush3.bf16.msra.mxu0 %v1217_v14  ;;  %v659_v45 = vld [vmem:[#allocation2] sm:$0x1] }
  0x7f   :  { %1219 = vmatprep.subr.bf16.mxu0 %v1353_v52 }
  0x82   :  { %1221 = vmatpush3.bf16.msra.mxu0 %v1220_v17 }
  0x83   :  { %1222 = vmatprep.subr.bf16.mxu0 %v1353_v52 }
  0x86   :  { %1224 = vmatpush3.bf16.msra.mxu0 %v1223_v20 }
 0x12c   :  { %v913_v55 = vpop.f32.mrb[0].mxu0 }
 0x12d   :  { %v914_v57 = vpop.f32.mrb[1].mxu0 }
 0x12e   :  { %v948_v58 = vpop.f32.mrb[0].mxu1  ;;  %v915_v59 = vadd.f32 %v914_v57, %v913_v55 }
 0x12f   :  { %v949_v60 = vpop.f32.mrb[1].mxu1 }
 0x130   :  { %v950_v61 = vadd.f32 %v949_v60, %v948_v58  ;;  %v244_v62 = vadd.f32 %v915_v59, %v872_v56  ;;  %v1357_v56 = vmov 1.0   ;;  %v679_v59 = vld [vmem:[#allocation3] sm:$0x1] }
 0x132   :  { %v314_v63 = vadd.f32 %v950_v61, %v244_v62  ;;  %v453_v1 = vpop.f32.mrb[2].mxu1  ;;  %v757_v62 = vld [vmem:[#allocation4] sm:$0x1] }
 0x133   :  { %v1025_v2 = vpop.f32.mrb[3].mxu1 }
 0x14c   :  { %v983_v3 = vpop.f32.mrb[2].mxu0 }
 0x14d   :  { %v984_v4 = vpop.f32.mrb[3].mxu0 }
 0x14e   :  { %v985_v5 = vadd.f32 %v984_v4, %v983_v3 }
 0x150   :  { %v384_v6 = vadd.f32 %v985_v5, %v314_v63 }
 0x152   :  { %v1445_v7 = vadd.f32 %v453_v1, %v384_v6 }
 0x154   :  { %v457_v8 = vmax.f32 %v1445_v7, 0.0 }
 0x156   :  { %1059 = vmatmul.mubr.f32.vlgmr.msra.gmra.mrb[4].mxu1 %v457_v8 }
 0x157   :  { %1082 = vmatprep.mubr.msk.f32.mxu1 %vm1354_vm0, %v1352_v0 }
 0x229   :  { %v545_v22 = vpop.f32.mrb[4].mxu1 }
 0x22a   :  { %v546_v23 = vadd.f32 %v874_v21, %v545_v22  ;;  %v1060_v24 = vpop.f32.mrb[5].mxu1 }
 0x22c   :  { %v875_v25 = vmul.f32 -1.442695, %v546_v23 }
 0x22e   :  { %1237 = vpow2.f32 %v875_v25 }
 0x238   :  { %v1238_v26 = vpop.eup %1237 }
 0x239   :  { %v553_v27 = vadd.f32 1.0, %v1238_v26 }
 0x23b   :  { %1239 = vrcp.f32 %v553_v27 }
 0x23c   :  { %1241 = vtanh.f32 %v546_v23 }
 0x245   :  { %v1240_v29 = vpop.eup %1239 }
 0x246   :  { %557 = vrot.lane.b32.xlu0 %v1240_v29, %s1356_s3  ;;  %v1242_v30 = vpop.eup %1241 }
 0x2b8   :  { %v558_v31 = vpop.permute.xlu0 %557 }
 0x2b9   :  { %v560_v52 = vmul.f32 %v1242_v30, %v558_v31 }
 0x2bb   :  { %1078 = vmatmul.mubr.msk.f32.vlgmr.msra.gmra.mrb[4].mxu0 %vm574_vm2, %v560_v52 }
 0x38e   :  { %v644_v36 = vpop.f32.mrb[4].mxu0 }
 0x38f   :  { %v645_v37 = vadd.f32 %v876_v35, %v644_v36  ;;  %v1079_v38 = vpop.f32.mrb[5].mxu0 }
 0x391   :  { %v658_v39 = vsel %vm655_vm3, %v645_v37, -1e+30 }
 0x392   :  { %v660_v40 = vrot.slane %v658_v39, 4 }
 0x394   :  { %v661_v41 = vmax.f32 %v658_v39, %v660_v40 }
 0x396   :  { %v662_v42 = vrot.slane %v661_v41, 2 }
 0x398   :  { %v663_v43 = vmax.f32 %v661_v41, %v662_v42 }
 0x39a   :  { %v664_v44 = vrot.slane %v663_v43, 1 }
 0x39c   :  { %v665_v46 = vmax.f32 %v663_v43, %v664_v44 }
 0x39e   :  { %v666_v48 = vmax.f32 %v659_v45, %v665_v46 }
 0x3a0   :  { %v674_v49 = vrot.slane %v666_v48, %v673_v47  ;;  %832 = vst [vmem:[#allocation2] sm:$0x1] %v666_v48  ;;  %v667_v50 = vsub.f32 %v659_v45, %v666_v48 }
 0x3a2   :  { %v676_v51 = vsub.f32 %v658_v39, %v674_v49  ;;  %v668_v57 = vmul.f32 1.442695, %v667_v50 }
 0x3a4   :  { %v677_v53 = vmul.f32 1.442695, %v676_v51 }
 0x3a6   :  { %1243 = vpow2.f32 %v677_v53 }
 0x3a7   :  { %1245 = vpow2.f32 %v668_v57 }
 0x3b0   :  { %v1244_v54 = vpop.eup %1243 }
 0x3b1   :  { %1081 = vmatpush3.msra.mxu1 %v1244_v54  ;;  %v759_v55 = vmul.f32 %v1244_v54, %v457_v8  ;;  %v1246_v58 = vpop.eup %1245  ;;  %v840_v8 = vld [vmem:[#allocation12 + $0xc3] sm:$0x1] }
 0x3b2   :  { %1083 = vmatmul.mubr.msk.f32.vlgmr.msra.gmra.mrb[6].mxu1 %vm681_vm4, %v1357_v56  ;;  %1085 = vmatprep.subr.mxu1 %v1352_v0  ;;  %v680_v60 = vmul.f32 %v1246_v58, %v679_v59  ;;  %v758_v2 = vmul.f32 %v1246_v58, %v757_v62 }
 0x3b3   :  { %1086 = vmatpush3.msra.mxu1 %v759_v55  ;;  %1087 = vmatprep.mubr.msk.f32.mxu1 %vm1354_vm0, %v1352_v0 }
 0x3b6   :  { %1088 = vmatmul.mubr.msk.f32.vlgmr.msra.gmra.mrb[8].mxu1 %vm681_vm4, %v1357_v56 }
 0x485   :  { %v751_v61 = vpop.f32.mrb[6].mxu1 }
 0x486   :  { %v755_v63 = vadd.f32 %v751_v61, %v680_v60  ;;  %v1084_v1 = vpop.f32.mrb[7].mxu1 }
 0x488   :  { %756 = vst [vmem:[#allocation3] sm:$0x1] %v755_v63 }
 0x489   :  { %v826_v3 = vpop.f32.mrb[8].mxu1 }
 0x48a   :  { %v830_v4 = vadd.f32 %v826_v3, %v758_v2  ;;  %v1089_v5 = vpop.f32.mrb[9].mxu1 }
 0x48c   :  { %831 = vst [vmem:[#allocation4] sm:$0x1] %v830_v4 }
 0x48f   :  { %v837_v6 = vld [vmem:[#allocation3] sm:$0x1] }
 0x490   :  { %1247 = vrcp.f32 %v837_v6 }
 0x493   :  { %v836_v0 = vld [vmem:[#allocation4] sm:$0x1] }
 0x49a   :  { %v1248_v7 = vpop.eup %1247 }
 0x49b   :  { %v839_v9 = vmul.f32 %v1248_v7, %v836_v0 }
 0x49d   :  { %v841_v10 = vmul.f32 %v840_v8, %v839_v9 }
 0x49f   :  { %v843_v11 = vsel %vm842_vm5, %v841_v10, 0.0 }
 0x4a0   :  { %844 = vadd.xlane.f32.xlu0 %v843_v11 }
 0x52d   :  { %v845_v13 = vpop.xlane.xlu0 %844 }
 0x52e   :  { %v847_v14 = vadd.f32 %v846_v12, %v845_v13 }
 0x530   :  { %v880_v15 = vmul.f32 -1.442695, %v847_v14 }
 0x532   :  { %1249 = vpow2.f32 %v880_v15 }
 0x53c   :  { %v1250_v16 = vpop.eup %1249 }
 0x53d   :  { %v851_v17 = vadd.f32 1.0, %v1250_v16 }
 0x53f   :  { %1251 = vrcp.f32 %v851_v17 }
 0x549   :  { %v1252_v18 = vpop.eup %1251 }
 0x54a   :  { %855 = vst.msk [vmem:[#allocation13] sm:$0x1] %vm854_vm6, %v1252_v18 }
 0x54b   :  { %1330 = shalt.err (!%p1327_p0)
}
 0x54c   :  { %s1331_s6 = scalar_lea.hbm %s1479_s4, 16 }
 0x54d   :  { %p1332_p1 = scmp.ne.s32.totalorder %s1479_s4, %s1331_s6  ;;  %p1335_p2 = scmp.lt.u32.totalorder %s1331_s6, %s1479_s4 }
 0x54f   :  { %p1337_p3 = pnand %p1335_p2, %p1332_p1 }
 0x551   :  { %1340 = shalt.err (!%p1337_p3)
}
 0x552   :  { %865 = dma.vmem_to_hbm [thread:$0]  %s863_s27, 16, %s1479_s4, [#allocation9]  }
 0x553   :  { %1345 = dma.done.wait [#allocation9], 16  }
 0x554   :  { %1346 = vsyncadd [#allocation9], 4294967280 }
 0x555   :  { %869 = vsyncpa [#allocation8], 1 }
 0x556   :  { %870 = vsyncpa [#allocation11], 1 }
 0x557   :  { %871 = vsyncpa [#allocation9], 1 }

</bundles_post_ra>
